<compile_context>
chip_gen: v6e
topology: v6e:2x2x1
jax: 0.10.0
libtpu: 0.0.40
codegen_flags: <defaults>
</compile_context>

<pallas_src>
import functools

import jax
import jax.numpy as jnp
from jax.experimental import pallas as pl
from jax.experimental.pallas import tpu as pltpu


def _simam_kernel(x_ref, o_ref, *, inv_n, e_lambda):
    # Block: (rows_block, H*W); each row is one (b, c) spatial plane.
    x = x_ref[...].astype(jnp.float32)
    mu = jnp.mean(x, axis=-1, keepdims=True)           # per-plane mean   (XLU)
    d = x - mu
    d2 = d * d
    s = jnp.sum(d2, axis=-1, keepdims=True)            # per-plane sum d2 (XLU)
    # One divide per *row* (on the (rows, 1) column), then a broadcast
    # multiply: keeps the per-element path to mul/add on the VPU (matters on
    # v7x where the higher HBM BW leaves fewer spare VALU cycles per byte).
    inv_den = 1.0 / (4.0 * (s * inv_n + e_lambda))     # (rows, 1)
    y = d2 * inv_den + 0.5
    gate = jax.nn.sigmoid(y)                           # logistic on the EUP
    o_ref[...] = (x * gate).astype(o_ref.dtype)


def _pick_rows_per_block(rows, bytes_per_row, target_block_bytes, min_grid_steps=8):
    """Rows per block: a multiple of 8 (sublane tile) or the full row count."""
    budget_rows = max(8, (target_block_bytes // max(bytes_per_row, 1)) // 8 * 8)

    if rows % 8 != 0:
        if rows <= budget_rows:
            return rows          # block == full dim: always legal, one step
        return budget_rows       # ragged tail: Pallas boundary masking

    rpb = min(rows, budget_rows)
    # Keep >= min_grid_steps grid steps when the row count allows it
    # (>= 4 per v7x TensorCore) so the BlockSpec double-buffer reaches
    # steady state and both cores get several blocks each.
    if rows // 8 >= min_grid_steps:
        rpb = min(rpb, max(8, (rows // min_grid_steps) // 8 * 8))
    # Prefer a block size that divides rows exactly (no ragged tail block),
    # but don't fragment below half the chosen size.
    for cand in range(rpb, max(8, rpb // 2) - 1, -8):
        if rows % cand == 0:
            return cand
    return rpb


def simam(x, e_lambda=1e-4, *, target_block_bytes=2 << 20):
    """SimAM: x * sigmoid(energy); reductions taken over H*W per (N, C)."""
    B, C, H, W = x.shape
    rows, cols = B * C, H * W
    dtype = x.dtype
    itemsize = jnp.dtype(dtype).itemsize

    # (B, C, H, W) -> (B*C, H*W): free, contiguous reshape (no data movement).
    x2d = x.reshape(rows, cols)

    # Whole rows per block (the reduction needs the full plane).  ~2 MiB
    # blocks sit on the measured HBM-roofline plateau and keep double-buffered
    # in+out (+ f32 temps) inside every generation's scoped-VMEM budget
    # (v5e 16 MiB default, v6e 32 MiB, v7x 64 MiB physical).
    rpb = _pick_rows_per_block(rows, cols * itemsize, target_block_bytes)
    grid_steps = pl.cdiv(rows, rpb)

    block_bytes = rpb * cols * itemsize
    block_f32_bytes = rpb * cols * 4
    # 2x double-buffered input + 2x output + a couple of f32 temps + headroom.
    vmem_limit = int(min(64 << 20,
                         max(32 << 20,
                             4 * block_bytes + 2 * block_f32_bytes + (1 << 20))))

    kernel = functools.partial(
        _simam_kernel,
        inv_n=1.0 / float(max(cols - 1, 1)),   # guard degenerate H*W == 1 plane
        e_lambda=float(e_lambda))

    out2d = pl.pallas_call(
        kernel,
        out_shape=jax.ShapeDtypeStruct((rows, cols), dtype),
        grid_spec=pltpu.PrefetchScalarGridSpec(
            num_scalar_prefetch=0,
            grid=(grid_steps,),
            in_specs=[pl.BlockSpec((rpb, cols), lambda i: (i, 0))],
            out_specs=pl.BlockSpec((rpb, cols), lambda i: (i, 0)),
        ),
        compiler_params=pltpu.CompilerParams(
            dimension_semantics=("parallel",),
            vmem_limit_bytes=vmem_limit,
        ),
        cost_estimate=pl.CostEstimate(
            flops=10 * rows * cols,
            transcendentals=rows * cols,
            bytes_accessed=2 * rows * cols * itemsize,
        ),
    )(x2d)

    # TODO(synk): planes with H*W not a multiple of 128 (e.g. 7x7/14x14 CNN
    # maps) leave lanes masked on the output store; a channels-on-lanes
    # (NHWC-style) block layout would be lane-dense for those shapes.
    # TODO(synk): extremely large planes (H*W >= ~256K f32) make even 8-row
    # blocks exceed VMEM; those need a two-pass tiled spatial reduction.
    return out2d.reshape(B, C, H, W)


def simam_ref(x, e_lambda=1e-4):
    b, c, h, w = x.shape
    n = w * h - 1
    mu = x.mean(axis=(2, 3), keepdims=True)
    d2 = (x - mu) ** 2
    y = d2 / (4.0 * (d2.sum(axis=(2, 3), keepdims=True) / n + e_lambda)) + 0.5
    return x * jax.nn.sigmoid(y)


if __name__ == "__main__":
    # Main case: NCHW conv feature map, lane-dense plane (16*16 = 2*128 lanes).
    x = jax.random.normal(jax.random.PRNGKey(0), (2, 4, 16, 16),
                          dtype=jnp.float32) * 2.0
    out = simam(x)
    jax.block_until_ready(out)
    assert out.shape == x.shape and out.dtype == x.dtype
    assert jnp.allclose(out, simam_ref(x), atol=1e-5, rtol=1e-5), "mismatch (main)"

    # Multi-block path: force small blocks so the grid has several steps.
    x2 = jax.random.normal(jax.random.PRNGKey(0), (4, 16, 16, 16),
                           dtype=jnp.float32)
    out2 = simam(x2, target_block_bytes=8 * 1024)
    jax.block_until_ready(out2)
    assert jnp.allclose(out2, simam_ref(x2), atol=1e-5, rtol=1e-5), "mismatch (multi)"

    # Non-8-multiple row count (B*C = 15): single full-dim block, no padding.
    x3 = jax.random.normal(jax.random.PRNGKey(0), (3, 5, 8, 8),
                           dtype=jnp.float32)
    out3 = simam(x3)
    jax.block_until_ready(out3)
    assert jnp.allclose(out3, simam_ref(x3), atol=1e-5, rtol=1e-5), "mismatch (ragged)"

    print("KERNEL_OK")
</pallas_src>

<mosaic_0001>
module attributes {stable_mosaic.version = 11 : i64} {
  func.func @_simam_kernel(%arg0: i32, %arg1: memref<8x256xf32, #tpu.memory_space<vmem>>, %arg2: memref<8x256xf32, #tpu.memory_space<vmem>>) attributes {dimension_semantics = [#tpu.dimension_semantics<parallel>], iteration_bounds = array<i64: 1>, scalar_prefetch = 0 : i64, scratch_operands = 0 : i64, tpu.core_type = #tpu.core_type<tc>, window_params = [{transform_indices = @transform_0, window_bounds = array<i64: 8, 256>}, {transform_indices = @transform_1, window_bounds = array<i64: 8, 256>}]} {
    %c0 = arith.constant 0 : index
    %c0_0 = arith.constant 0 : index
    %0 = vector.load %arg1[%c0, %c0_0] : memref<8x256xf32, #tpu.memory_space<vmem>>, vector<8x256xf32>
    %cst = arith.constant dense<0.000000e+00> : vector<8xf32>
    %1 = vector.multi_reduction <add>, %0, %cst [1] : vector<8x256xf32> to vector<8xf32>
    %2 = vector.shape_cast %1 : vector<8xf32> to vector<8x1xf32>
    %cst_1 = arith.constant 2.560000e+02 : f32
    %3 = vector.broadcast %cst_1 : f32 to vector<8x1xf32>
    %4 = arith.divf %2, %3 : vector<8x1xf32>
    %5 = vector.broadcast %4 : vector<8x1xf32> to vector<8x256xf32>
    %6 = arith.subf %0, %5 : vector<8x256xf32>
    %7 = arith.mulf %6, %6 : vector<8x256xf32>
    %cst_2 = arith.constant dense<0.000000e+00> : vector<8xf32>
    %8 = vector.multi_reduction <add>, %7, %cst_2 [1] : vector<8x256xf32> to vector<8xf32>
    %9 = vector.shape_cast %8 : vector<8xf32> to vector<8x1xf32>
    %cst_3 = arith.constant 0.00392156886 : f32
    %10 = vector.broadcast %cst_3 : f32 to vector<8x1xf32>
    %11 = arith.mulf %9, %10 : vector<8x1xf32>
    %cst_4 = arith.constant 9.99999974E-5 : f32
    %12 = vector.broadcast %cst_4 : f32 to vector<8x1xf32>
    %13 = arith.addf %11, %12 : vector<8x1xf32>
    %cst_5 = arith.constant 4.000000e+00 : f32
    %14 = vector.broadcast %cst_5 : f32 to vector<8x1xf32>
    %15 = arith.mulf %14, %13 : vector<8x1xf32>
    %cst_6 = arith.constant 1.000000e+00 : f32
    %16 = vector.broadcast %cst_6 : f32 to vector<8x1xf32>
    %17 = arith.divf %16, %15 : vector<8x1xf32>
    %18 = vector.broadcast %17 : vector<8x1xf32> to vector<8x256xf32>
    %19 = arith.mulf %7, %18 : vector<8x256xf32>
    %cst_7 = arith.constant 5.000000e-01 : f32
    %20 = vector.broadcast %cst_7 : f32 to vector<8x256xf32>
    %21 = arith.addf %19, %20 : vector<8x256xf32>
    %22 = arith.negf %21 : vector<8x256xf32>
    %23 = math.exp %22 : vector<8x256xf32>
    %cst_8 = arith.constant 1.000000e+00 : f32
    %24 = vector.broadcast %cst_8 : f32 to vector<8x256xf32>
    %25 = arith.addf %24, %23 : vector<8x256xf32>
    %26 = arith.divf %24, %25 : vector<8x256xf32>
    %27 = arith.mulf %0, %26 : vector<8x256xf32>
    %c0_9 = arith.constant 0 : index
    %c0_10 = arith.constant 0 : index
    %28 = vector.load %arg2[%c0_9, %c0_10] : memref<8x256xf32, #tpu.memory_space<vmem>>, vector<8x256xf32>
    tpu.vector_store %arg2[%c0_9, %c0_10], %27 {strides = array<i32>} : memref<8x256xf32, #tpu.memory_space<vmem>>, vector<8x256xf32>,
    return
  }
  func.func @transform_0(%arg0: i32) -> (i32, i32) {
    %c0_i32 = arith.constant 0 : i32
    %c0_i32_0 = arith.constant 0 : i32
    return %arg0, %c0_i32 : i32, i32
  }
  func.func @transform_1(%arg0: i32) -> (i32, i32) {
    %c0_i32 = arith.constant 0 : i32
    %c0_i32_0 = arith.constant 0 : i32
    return %arg0, %c0_i32 : i32, i32
  }
}

</mosaic_0001>

<bundles_post_ra>
// kernel: tpu_custom_call.1
= control target key start
LH: loop header
LB: loop body
LE: loop exit
PB: predicated region body
PF: predicated region fallthrough
CT: control target
= control target key end

     0   :  { %6 = vsyncpa [#allocation3], 0  ;;  %s151_s0 = inlined_call_operand.hbm [shape: f32[8,256], index: 0, kind: input, shape index: {}]   ;;  %s152_s1 = inlined_call_operand.hbm [shape: f32[8,256], index: 1, kind: output, shape index: {}]  }
   0x1   :  { %7 = vsyncpa [#allocation4], 0  ;;  %s133_s6 = smov [#allocation2]  }
   0x2   :  { %s14_s7 = sshll.u32 %s133_s6, 4  ;;  %s15_s7 = int_to_ptr.vmem [resolvable:$true] %s14_s7 }
   0x3   :  { %s97_s8 = scalar_lea.vmem %s15_s7, 256  ;;  %p102_p1 = scmp.lt.s32.totalorder %s15_s7, %s15_s7 }
   0x4   :  { %p98_p0 = scmp.ne.s32.totalorder %s15_s7, %s97_s8  ;;  %p103_p2 = scmp.lt.s32.totalorder %s97_s8, %s97_s8 }
   0x6   :  { %p104_p3 = por %p103_p2, %p102_p1 }
   0x8   :  { %p105_p4 = pnand %p104_p3, %p98_p0 }
   0xa   :  { %108 = shalt.err (!%p105_p4)
}
   0xb   :  { %17 = dma.hbm_to_vmem [thread:$0]  %s151_s0, 256, %s15_s7, [#allocation3]  }
   0xc   :  { %129 = dma.done.wait [#allocation3], 256  }
   0xd   :  { %130 = vsyncadd [#allocation3], 4294967040  ;;  %v21_v0 = vld [vmem:[#allocation2] sm:$0xff]  ;;  %v22_v1 = vld [vmem:[#allocation2 + $0x8] sm:$0xff]  ;;  %s134_s0 = smov [#allocation5]  }
   0xe   :  { %v23_v2 = vadd.f32 %v22_v1, %v21_v0  ;;  %s66_s11 = sshll.u32 %s134_s0, 4  ;;  %s67_s11 = int_to_ptr.vmem [resolvable:$true] %s66_s11 }
   0xf   :  { %s109_s12 = scalar_lea.vmem %s67_s11, 256  ;;  %p114_p6 = scmp.lt.s32.totalorder %s67_s11, %s67_s11 }
  0x10   :  { %24 = vadd.xlane.f32.xlu0 %v23_v2  ;;  %p110_p5 = scmp.ne.s32.totalorder %s67_s11, %s109_s12  ;;  %p115_p7 = scmp.lt.s32.totalorder %s109_s12, %s109_s12 }
  0x12   :  { %p116_p8 = por %p115_p7, %p114_p6 }
  0x14   :  { %p117_p9 = pnand %p116_p8, %p110_p5 }
  0x99   :  { %v25_v3 = vpop.xlane.xlu0 %24 }
  0x9a   :  { %v27_v4 = vmul.f32 0.00390625, %v25_v3 }
  0x9c   :  { %v28_v5 = vsub.f32 %v21_v0, %v27_v4  ;;  %v29_v6 = vsub.f32 %v22_v1, %v27_v4 }
  0x9e   :  { %v30_v7 = vmul.f32 %v28_v5, %v28_v5  ;;  %v31_v8 = vmul.f32 %v29_v6, %v29_v6 }
  0xa0   :  { %v32_v9 = vadd.f32 %v31_v8, %v30_v7 }
  0xa2   :  { %33 = vadd.xlane.f32.xlu0 %v32_v9 }
 0x12b   :  { %v34_v10 = vpop.xlane.xlu0 %33 }
 0x12c   :  { %v35_v11 = vmul.f32 0.003921569, %v34_v10 }
 0x12e   :  { %v36_v12 = vadd.f32 0.0001, %v35_v11 }
 0x130   :  { %v37_v13 = vmul.f32 4.0, %v36_v12 }
 0x132   :  { %79 = vrcp.f32 %v37_v13 }
 0x13f   :  { %v80_v14 = vpop.eup %79 }
 0x140   :  { %v40_v15 = vmul.f32 %v80_v14, %v30_v7  ;;  %v41_v16 = vmul.f32 %v80_v14, %v31_v8 }
 0x142   :  { %v42_v17 = vadd.f32 0.5, %v40_v15  ;;  %v43_v18 = vadd.f32 0.5, %v41_v16 }
 0x144   :  { %v75_v19 = vmul.f32 -1.442695, %v42_v17  ;;  %v76_v20 = vmul.f32 -1.442695, %v43_v18 }
 0x146   :  { %81 = vpow2.f32 %v75_v19 }
 0x147   :  { %83 = vpow2.f32 %v76_v20 }
 0x153   :  { %v82_v21 = vpop.eup %81 }
 0x154   :  { %v84_v22 = vpop.eup %83  ;;  %v50_v23 = vadd.f32 1.0, %v82_v21 }
 0x155   :  { %v51_v24 = vadd.f32 1.0, %v84_v22 }
 0x156   :  { %85 = vrcp.f32 %v50_v23 }
 0x157   :  { %87 = vrcp.f32 %v51_v24 }
 0x163   :  { %v86_v25 = vpop.eup %85 }
 0x164   :  { %v88_v26 = vpop.eup %87  ;;  %v56_v27 = vmul.f32 %v86_v25, %v21_v0 }
 0x165   :  { %v57_v28 = vmul.f32 %v88_v26, %v22_v1 }
 0x166   :  { %58 = vst [vmem:[#allocation5] sm:$0xff] %v56_v27 }
 0x167   :  { %59 = vst [vmem:[#allocation5 + $0x8] sm:$0xff] %v57_v28 }
 0x168   :  { %120 = shalt.err (!%p117_p9)
}
 0x169   :  { %69 = dma.vmem_to_hbm [thread:$0]  %s67_s11, 256, %s152_s1, [#allocation4]  }
 0x16a   :  { %131 = dma.done.wait [#allocation4], 256  }
 0x16b   :  { %132 = vsyncadd [#allocation4], 4294967040 }
 0x16c   :  { %73 = vsyncpa [#allocation3], 1 }
 0x16d   :  { %74 = vsyncpa [#allocation4], 1 }

</bundles_post_ra>
